<compile_context>
chip_gen: v7x
topology: tpu7x:2x2x1
jax: 0.10.0
libtpu: 0.0.40
codegen_flags: <defaults>
</compile_context>

<pallas_src>
import jax
import jax.numpy as jnp
import numpy as np
from jax.experimental import pallas as pl
from jax.experimental.pallas import tpu as pltpu


def _upsample_conv_kernel(xh_ref, g_ref, bias_ref, o_ref):
    """One (image, row-tile) step of the fused 2x-nearest-upsample + 3x3 conv.

    xh_ref   : VMEM (1, H+2, C*W)     H-padded input, channels folded into lanes
    g_ref    : VMEM (4, C*W, C*2W)    fused upsample+conv+col-interleave matrices
                                      [G_even_rr0, G_even_rr1, G_odd_rr1, G_odd_rr2]
    bias_ref : VMEM (1, C*2W)         lane-replicated conv bias
    o_ref    : VMEM (1, 2, tH, C*2W)  [even output rows | odd output rows]
    """
    th = o_ref.shape[2]
    row_base = pl.program_id(1) * th
    if th % 8 == 0:
        row_base = pl.multiple_of(row_base, 8)

    # Three overlapping row slabs of the H-padded, channel-folded input.
    y0 = xh_ref[0, pl.ds(row_base + 0, th), :]
    y1 = xh_ref[0, pl.ds(row_base + 1, th), :]
    y2 = xh_ref[0, pl.ds(row_base + 2, th), :]

    bias = bias_ref[...]
    even = (jnp.dot(y0, g_ref[0], preferred_element_type=jnp.float32)
            + jnp.dot(y1, g_ref[1], preferred_element_type=jnp.float32)
            + bias)
    odd = (jnp.dot(y1, g_ref[2], preferred_element_type=jnp.float32)
           + jnp.dot(y2, g_ref[3], preferred_element_type=jnp.float32)
           + bias)

    # Dense, full-width (C*2W-lane) stores.
    o_ref[0, 0] = even.astype(o_ref.dtype)
    o_ref[0, 1] = odd.astype(o_ref.dtype)


def _build_fused_matrices(w_oihw, w):
    """Fold upsample + 3x3 taps + channel contraction + column interleave into
    four (C*W, C*2W) matrices.  Entries are exact sums of original conv taps."""
    c = w_oihw.shape[0]
    two_w = 2 * w

    # Column incidence: acol[dc, jj, oj] = 1 iff output column oj, conv column
    # tap dc reads original column jj (taps landing on the zero pad are dropped,
    # which is exactly the zero contribution).
    acol = np.zeros((3, w, two_w), np.float32)
    for dc in range(3):
        for oj in range(two_w):
            src = oj + dc - 1                  # column in padded upsampled image
            if 0 <= src < two_w:
                acol[dc, src // 2, oj] = 1.0

    # Row tap selection: srow[pi, rr, dr] = 1 iff output rows of parity pi, conv
    # row tap dr read H-padded input row (ii + rr), rr in {0,1,2}.
    srow = np.zeros((2, 3, 3), np.float32)
    srow[0, 0, 0] = 1.0                        # even rows: tap 0 -> row above
    srow[0, 1, 1] = 1.0                        # even rows: taps 1,2 -> same row
    srow[0, 1, 2] = 1.0
    srow[1, 1, 0] = 1.0                        # odd rows: taps 0,1 -> same row
    srow[1, 1, 1] = 1.0
    srow[1, 2, 2] = 1.0                        # odd rows: tap 2 -> row below

    # g_all[pi, rr, ci, jj, co, oj]
    g_all = jnp.einsum('prd,oide,ejk->prijok',
                       srow, w_oihw.astype(jnp.float32), acol)
    g_all = g_all.reshape(2, 3, c * w, c * two_w)
    # Even output rows use rr in {0,1}; odd output rows use rr in {1,2}.
    return jnp.stack([g_all[0, 0], g_all[0, 1], g_all[1, 1], g_all[1, 2]])


def upsample_forward(x_nchw, w_oihw, bias, *, tile_h=None):
    """Nearest 2x upsample + 3x3 same conv.  x: (N, C, H, W) -> (N, C, 2H, 2W)."""
    n, c, h, w = x_nchw.shape
    assert w_oihw.shape == (c, c, 3, 3)
    # TODO(synk): at large channel counts (C >= ~16) the fused-G matrices grow as
    # O(C^2 W^2); switch to the NHWC im2col (tH*W, 4C) @ (4C, C) per-phase MXU path.

    # Grid-step choice: collapse the row-tile axis when the per-image output is
    # small (per-step pipeline overhead ~0.35us dominates tiny tiles); otherwise
    # pick a tile_h that divides H and is a multiple of 8.
    if tile_h is None:
        if c * (2 * h) * (2 * w) * 4 <= (4 << 20):
            tile_h = h
        else:
            tile_h = h
            for cand in (128, 64, 32, 16, 8):
                if h % cand == 0:
                    tile_h = cand
                    break
    if h % tile_h != 0:
        tile_h = h
    assert tile_h == h or tile_h % 8 == 0

    # VMEM sanity for the small-C fused-G path (keeps headroom on v7x's 64 MiB).
    g_bytes = 4 * (c * w) * (c * 2 * w) * 4
    img_bytes = (h + 2) * c * w * 4
    out_blk_bytes = 2 * tile_h * c * 2 * w * 4
    assert 2 * (g_bytes + img_bytes + out_blk_bytes) <= (28 << 20), \
        "fused-G path is a small-C*W specialization; use the im2col MXU path"

    # Wrapper-side layout plumbing (input is 4x smaller than the output):
    #   NCHW -> (N, H, C, W) -> pad one zero row top/bottom -> (N, H+2, C*W).
    # Channels fold into the lane axis so kernel loads/matmuls/stores are
    # lane-dense and the 3x3 row halo is a plain in-bounds row slice.
    xh = jnp.transpose(x_nchw, (0, 2, 1, 3)).astype(jnp.float32)
    xh = jnp.pad(xh, ((0, 0), (1, 1), (0, 0), (0, 0)))
    xh = xh.reshape(n, h + 2, c * w)

    g = _build_fused_matrices(w_oihw, w)                           # (4, C*W, C*2W)
    bias_lane = jnp.repeat(bias.astype(jnp.float32), 2 * w).reshape(1, c * 2 * w)

    out = pl.pallas_call(
        _upsample_conv_kernel,
        out_shape=jax.ShapeDtypeStruct((n, 2, h, c * 2 * w), x_nchw.dtype),
        grid=(n, h // tile_h),
        in_specs=[
            # Whole H-padded image per batch element; constant along the row-tile
            # axis so it stays resident in VMEM across row tiles of one image.
            pl.BlockSpec((1, h + 2, c * w), lambda b, i: (b, 0, 0)),
            # Fused weight matrices and bias: grid-invariant, resident.
            pl.BlockSpec((4, c * w, c * 2 * w), lambda b, i: (0, 0, 0)),
            pl.BlockSpec((1, c * 2 * w), lambda b, i: (0, 0)),
        ],
        out_specs=pl.BlockSpec((1, 2, tile_h, c * 2 * w),
                               lambda b, i: (b, 0, i, 0)),
        compiler_params=pltpu.CompilerParams(
            # No cross-iteration state -> both axes may shard across TCs (v7x).
            dimension_semantics=("parallel", "parallel"),
            vmem_limit_bytes=32 * 1024 * 1024),
    )(xh, g, bias_lane)

    # Free reshapes + one output-sized transpose back to the module's NCHW layout
    # (this transpose also performs the even/odd row interleave).
    y = out.reshape(n, 2, h, c, 2 * w)
    y = jnp.transpose(y, (0, 3, 2, 1, 4)).reshape(n, c, 2 * h, 2 * w)
    return y


def _reference(x_nchw, w_oihw, bias):
    """Pure-JAX reference (lax conv on the materialized nearest upsample)."""
    x_up = jnp.repeat(jnp.repeat(x_nchw, 2, axis=2), 2, axis=3)
    out = jax.lax.conv_general_dilated(
        x_up.astype(jnp.float32), w_oihw.astype(jnp.float32),
        window_strides=(1, 1), padding=((1, 1), (1, 1)),
        dimension_numbers=("NCHW", "OIHW", "NCHW"))
    return out + bias.astype(jnp.float32)[None, :, None, None]


if __name__ == "__main__":
    key = jax.random.PRNGKey(0)
    kx, kw, kb = jax.random.split(key, 3)

    N, C, H, W = 2, 4, 16, 16
    x = jax.random.normal(kx, (N, C, H, W), dtype=jnp.float32)

    # Deterministic Conv2d-style init (kaiming-uniform-ish bounds).
    fan_in = C * 3 * 3
    bound = 1.0 / float(np.sqrt(fan_in))
    wgt = jax.random.uniform(kw, (C, C, 3, 3), jnp.float32, -bound, bound)  # OIHW
    b = jax.random.uniform(kb, (C,), jnp.float32, -bound, bound)

    out = jax.block_until_ready(upsample_forward(x, wgt, b))
    ref = jax.block_until_ready(_reference(x, wgt, b))

    assert out.shape == (N, C, 2 * H, 2 * W), out.shape
    err = float(jnp.max(jnp.abs(out.astype(jnp.float32) - ref)))
    assert jnp.allclose(out.astype(jnp.float32), ref, atol=1e-4, rtol=1e-4), err

    print("KERNEL_OK")
</pallas_src>

<mosaic_0001>
module attributes {stable_mosaic.version = 11 : i64} {
  func.func @_upsample_conv_kernel(%arg0: i32, %arg1: i32, %arg2: memref<1x18x64xf32, #tpu.memory_space<vmem>>, %arg3: memref<4x64x128xf32, #tpu.memory_space<vmem>>, %arg4: memref<1x128xf32, #tpu.memory_space<vmem>>, %arg5: memref<1x2x16x128xf32, #tpu.memory_space<vmem>>) attributes {dimension_semantics = [#tpu.dimension_semantics<parallel>, #tpu.dimension_semantics<parallel>], iteration_bounds = array<i64: 2, 1>, scalar_prefetch = 0 : i64, scratch_operands = 0 : i64, tpu.core_type = #tpu.core_type<tc>, window_params = [{transform_indices = @transform_0, window_bounds = array<i64: 1, 18, 64>}, {pipeline_mode = #tpu.pipeline_mode<synchronous>, transform_indices = @transform_1, window_bounds = array<i64: 4, 64, 128>}, {pipeline_mode = #tpu.pipeline_mode<synchronous>, transform_indices = @transform_2, window_bounds = array<i64: 1, 128>}, {transform_indices = @transform_3, window_bounds = array<i64: 1, 2, 16, 128>}]} {
    %c16_i32 = arith.constant 16 : i32
    %0 = arith.muli %arg1, %c16_i32 : i32
    %1 = tpu.assume_multiple %0, 8 : i32
    %c0_i32 = arith.constant 0 : i32
    %2 = arith.addi %1, %c0_i32 : i32
    %c0 = arith.constant 0 : index
    %3 = arith.index_cast %2 : i32 to index
    %c0_0 = arith.constant 0 : index
    %4 = vector.load %arg2[%c0, %3, %c0_0] : memref<1x18x64xf32, #tpu.memory_space<vmem>>, vector<1x16x64xf32>
    %5 = vector.shape_cast %4 : vector<1x16x64xf32> to vector<16x64xf32>
    %c1_i32 = arith.constant 1 : i32
    %6 = arith.addi %1, %c1_i32 : i32
    %c0_1 = arith.constant 0 : index
    %7 = arith.index_cast %6 : i32 to index
    %c0_2 = arith.constant 0 : index
    %8 = vector.load %arg2[%c0_1, %7, %c0_2] : memref<1x18x64xf32, #tpu.memory_space<vmem>>, vector<1x16x64xf32>
    %9 = vector.shape_cast %8 : vector<1x16x64xf32> to vector<16x64xf32>
    %c2_i32 = arith.constant 2 : i32
    %10 = arith.addi %1, %c2_i32 : i32
    %c0_3 = arith.constant 0 : index
    %11 = arith.index_cast %10 : i32 to index
    %c0_4 = arith.constant 0 : index
    %12 = vector.load %arg2[%c0_3, %11, %c0_4] : memref<1x18x64xf32, #tpu.memory_space<vmem>>, vector<1x16x64xf32>
    %13 = vector.shape_cast %12 : vector<1x16x64xf32> to vector<16x64xf32>
    %c0_5 = arith.constant 0 : index
    %c0_6 = arith.constant 0 : index
    %14 = vector.load %arg4[%c0_5, %c0_6] : memref<1x128xf32, #tpu.memory_space<vmem>>, vector<1x128xf32>
    %c0_7 = arith.constant 0 : index
    %c0_8 = arith.constant 0 : index
    %c0_9 = arith.constant 0 : index
    %15 = vector.load %arg3[%c0_7, %c0_8, %c0_9] : memref<4x64x128xf32, #tpu.memory_space<vmem>>, vector<1x64x128xf32>
    %16 = vector.shape_cast %15 : vector<1x64x128xf32> to vector<64x128xf32>
    %cst = arith.constant dense<0.000000e+00> : vector<16x128xf32>
    %17 = tpu.matmul %5, %16, %cst {dimension_numbers = #tpu.dot_dimension_numbers<[1], [0], [0], [1], [0, 0, 1, 1], [], []>} : vector<16x64xf32>, vector<64x128xf32>, vector<16x128xf32> -> vector<16x128xf32>
    %c1 = arith.constant 1 : index
    %c0_10 = arith.constant 0 : index
    %c0_11 = arith.constant 0 : index
    %18 = vector.load %arg3[%c1, %c0_10, %c0_11] : memref<4x64x128xf32, #tpu.memory_space<vmem>>, vector<1x64x128xf32>
    %19 = vector.shape_cast %18 : vector<1x64x128xf32> to vector<64x128xf32>
    %cst_12 = arith.constant dense<0.000000e+00> : vector<16x128xf32>
    %20 = tpu.matmul %9, %19, %cst_12 {dimension_numbers = #tpu.dot_dimension_numbers<[1], [0], [0], [1], [0, 0, 1, 1], [], []>} : vector<16x64xf32>, vector<64x128xf32>, vector<16x128xf32> -> vector<16x128xf32>
    %21 = arith.addf %17, %20 : vector<16x128xf32>
    %22 = vector.broadcast %14 : vector<1x128xf32> to vector<16x128xf32>
    %23 = arith.addf %21, %22 : vector<16x128xf32>
    %c2 = arith.constant 2 : index
    %c0_13 = arith.constant 0 : index
    %c0_14 = arith.constant 0 : index
    %24 = vector.load %arg3[%c2, %c0_13, %c0_14] : memref<4x64x128xf32, #tpu.memory_space<vmem>>, vector<1x64x128xf32>
    %25 = vector.shape_cast %24 : vector<1x64x128xf32> to vector<64x128xf32>
    %cst_15 = arith.constant dense<0.000000e+00> : vector<16x128xf32>
    %26 = tpu.matmul %9, %25, %cst_15 {dimension_numbers = #tpu.dot_dimension_numbers<[1], [0], [0], [1], [0, 0, 1, 1], [], []>} : vector<16x64xf32>, vector<64x128xf32>, vector<16x128xf32> -> vector<16x128xf32>
    %c3 = arith.constant 3 : index
    %c0_16 = arith.constant 0 : index
    %c0_17 = arith.constant 0 : index
    %27 = vector.load %arg3[%c3, %c0_16, %c0_17] : memref<4x64x128xf32, #tpu.memory_space<vmem>>, vector<1x64x128xf32>
    %28 = vector.shape_cast %27 : vector<1x64x128xf32> to vector<64x128xf32>
    %cst_18 = arith.constant dense<0.000000e+00> : vector<16x128xf32>
    %29 = tpu.matmul %13, %28, %cst_18 {dimension_numbers = #tpu.dot_dimension_numbers<[1], [0], [0], [1], [0, 0, 1, 1], [], []>} : vector<16x64xf32>, vector<64x128xf32>, vector<16x128xf32> -> vector<16x128xf32>
    %30 = arith.addf %26, %29 : vector<16x128xf32>
    %31 = vector.broadcast %14 : vector<1x128xf32> to vector<16x128xf32>
    %32 = arith.addf %30, %31 : vector<16x128xf32>
    %c0_19 = arith.constant 0 : index
    %c0_20 = arith.constant 0 : index
    %c0_21 = arith.constant 0 : index
    %c0_22 = arith.constant 0 : index
    %33 = vector.load %arg5[%c0_19, %c0_20, %c0_21, %c0_22] : memref<1x2x16x128xf32, #tpu.memory_space<vmem>>, vector<1x1x16x128xf32>
    %34 = vector.shape_cast %33 : vector<1x1x16x128xf32> to vector<16x128xf32>
    %35 = vector.shape_cast %23 : vector<16x128xf32> to vector<1x1x16x128xf32>
    tpu.vector_store %arg5[%c0_19, %c0_20, %c0_21, %c0_22], %35 {strides = array<i32>} : memref<1x2x16x128xf32, #tpu.memory_space<vmem>>, vector<1x1x16x128xf32>,
    %c0_23 = arith.constant 0 : index
    %c1_24 = arith.constant 1 : index
    %c0_25 = arith.constant 0 : index
    %c0_26 = arith.constant 0 : index
    %36 = vector.load %arg5[%c0_23, %c1_24, %c0_25, %c0_26] : memref<1x2x16x128xf32, #tpu.memory_space<vmem>>, vector<1x1x16x128xf32>
    %37 = vector.shape_cast %36 : vector<1x1x16x128xf32> to vector<16x128xf32>
    %38 = vector.shape_cast %32 : vector<16x128xf32> to vector<1x1x16x128xf32>
    tpu.vector_store %arg5[%c0_23, %c1_24, %c0_25, %c0_26], %38 {strides = array<i32>} : memref<1x2x16x128xf32, #tpu.memory_space<vmem>>, vector<1x1x16x128xf32>,
    return
  }
  func.func @transform_0(%arg0: i32, %arg1: i32) -> (i32, i32, i32) {
    %c0_i32 = arith.constant 0 : i32
    %c0_i32_0 = arith.constant 0 : i32
    %c0_i32_1 = arith.constant 0 : i32
    return %arg0, %c0_i32, %c0_i32_0 : i32, i32, i32
  }
  func.func @transform_1(%arg0: i32, %arg1: i32) -> (i32, i32, i32) {
    %c0_i32 = arith.constant 0 : i32
    %c0_i32_0 = arith.constant 0 : i32
    %c0_i32_1 = arith.constant 0 : i32
    %c0_i32_2 = arith.constant 0 : i32
    return %c0_i32, %c0_i32_0, %c0_i32_1 : i32, i32, i32
  }
  func.func @transform_2(%arg0: i32, %arg1: i32) -> (i32, i32) {
    %c0_i32 = arith.constant 0 : i32
    %c0_i32_0 = arith.constant 0 : i32
    %c0_i32_1 = arith.constant 0 : i32
    return %c0_i32, %c0_i32_0 : i32, i32
  }
  func.func @transform_3(%arg0: i32, %arg1: i32) -> (i32, i32, i32, i32) {
    %c0_i32 = arith.constant 0 : i32
    %c0_i32_0 = arith.constant 0 : i32
    %c0_i32_1 = arith.constant 0 : i32
    return %arg0, %c0_i32, %arg1, %c0_i32_0 : i32, i32, i32, i32
  }
}

</mosaic_0001>

<bundles_post_ra>
// kernel: tpu_custom_call.1
= control target key start
LH: loop header
LB: loop body
LE: loop exit
PB: predicated region body
PF: predicated region fallthrough
CT: control target
= control target key end

     0   :  { %8 = vsyncpa [#allocation3], 0  ;;  %s1285_s0 = inlined_call_operand.vmem [shape: f32[2,18,64], index: 0, kind: input, shape index: {}]   ;;  %s1286_s1 = inlined_call_operand.hbm [shape: f32[4,64,128], index: 1, kind: input, shape index: {}]   ;;  %s1287_s2 = inlined_call_operand.vmem [shape: f32[1,128], index: 2, kind: input, shape index: {}]   ;;  %s1288_s3 = inlined_call_operand.hbm [shape: f32[2,2,16,128], index: 3, kind: output, shape index: {}]  }
   0x1   :  { %9 = vsyncpa [#allocation4], 0 }
   0x2   :  { %11 = vsyncpa [#allocation4 + $0x1], 0  ;;  %s1113_s12 = smov 0   ;;  %s1115_s13 = smov 0  }
   0x3   :  { %s1117_s14 = smov 0   ;;  %s1119_s15 = smov 0  }
   0x4   :  { %s1121_s16 = smov 0   ;;  %s1123_s17 = smov 0  }
   0x5 LB: > { %s690_s18 = sadd.s32 4294967295, %s1085_s17   ;;  %s691_s19 = sadd.s32 4294967294, %s1085_s17   ;;  %s1085_s17 = sphi %s1123_s17, %s17_s17   ;;  %s1081_s16 = sphi %s1121_s16, %s1306_s16   ;;  %s1077_s15 = sphi %s1119_s15, %s1305_s15   ;;  %s1073_s14 = sphi %s1117_s14, %s1304_s14   ;;  %s1069_s13 = sphi %s1115_s13, %s1303_s13   ;;  %s1065_s12 = sphi %s1113_s12, %s1302_s12  }
   0x6   : > { %s29_s20 = sadd.s32 1, %s1081_s16  ;;  %s106_s21 = sadd.s32 1, %s1073_s14 }
   0x7   : > { %p31_p0 = scmp.ge.s32.totalorder %s29_s20, 2  ;;  %p116_p1 = scmp.ne.s32.totalorder %s1073_s14, %s1069_s13 }
   0x8   : > { %p117_p2 = scmp.eq.s32.totalorder %s690_s18, 1  ;;  %p122_p3 = scmp.ne.s32.totalorder %s1069_s13, %s1065_s12 }
   0x9   : > { %s1308_s20 = smov (%p31_p0, %s29_s20), 0  ;;  %p123_p5 = scmp.eq.s32.totalorder %s691_s19, 1 }
   0xa   : > { %p1153_p4 = por %p117_p2, %p116_p1  ;;  %s101_s23 = ssub.s32 %s1081_s16, %s1308_s20 }
   0xb   : > { %p692_p6 = scmp.ge.s32.totalorder %s1085_s17, 1  ;;  %p104_p7 = scmp.eq.s32.totalorder %s101_s23, 0 }
   0xc   : > { %s1293_s22 = scalar_select %p1153_p4, 1, 0 }
   0xd   : > { %p1160_p8 = por %p123_p5, %p122_p3  ;;  %p130_p9 = scmp.lt.s32.totalorder %s1085_s17, 3 }
   0xe   : > { %s1166_s25 = scalar_select %p104_p7, %s1073_s14, %s106_s21  }
   0xf   : > { %s1294_s24 = scalar_select %p1160_p8, 1, 0 }
  0x10   : > { %p1168_p10 = pnand %p692_p6, %p130_p9  ;;  %p1172_p11 = scmp.eq.s32.totalorder %s690_s18, 0 }
  0x11   : > { %s1087_s28 = smov [#allocation2]   ;;  %s975_s6 = scalar_lea.hbm %s1286_s1, 4096 }
  0x12   : > { %s1295_s26 = scalar_select %p1168_p10, 1, 0 }
  0x13   : > { %s1296_s27 = scalar_select %p1172_p11, 1, 0 }
  0x14   : > { %p911_p12 = pneg %p1168_p10  ;;  %s142_s29 = sshll.u32 %s1087_s28, 4  ;;  %s143_s29 = int_to_ptr.vmem [resolvable:$true] %s142_s29 }
  0x15   : > { %p976_p0 = scmp.ne.s32.totalorder %s1286_s1, %s975_s6  ;;  %p982_p5 = scmp.lt.u32.totalorder %s975_s6, %s1286_s1 }
  0x16   : > { %p1180_p13 = pnand %p1172_p11, %p911_p12 }
  0x18   : > { %p977_p1 = pneg %p1180_p13 }
  0x1a   : > { %p978_p2 = pnand %p977_p1, %p976_p0 }
  0x1c   : > { %p979_p3 = pneg %p978_p2 }
  0x1e   : > { %p984_p6 = pnand %p982_p5, %p979_p3 }
  0x20   : > { %987 = shalt.err (!%p984_p6)
}
  0x21   : > { %s988_s11 = scalar_lea.vmem %s143_s29, 4096  ;;  %p996_p8 = scmp.lt.s32.totalorder %s143_s29, %s143_s29 }
  0x22   : > { %p989_p7 = scmp.ne.s32.totalorder %s143_s29, %s988_s11  ;;  %p997_p4 = scmp.lt.s32.totalorder %s988_s11, %s988_s11 }
  0x24   : > { %p991_p9 = pnand %p989_p7, %p977_p1  ;;  %p998_p11 = por %p997_p4, %p996_p8 }
  0x26   : > { %p992_p12 = pneg %p991_p9 }
  0x28   : > { %p999_p10 = pnand %p998_p11, %p992_p12 }
  0x2a   : > { %1002 = shalt.err (!%p999_p10)
}
  0x2b   : > { %s1088_s18 = smov 128   ;;  %s1089_s19 = smov 8  }
  0x2c   : > { %914 = dma.hbm_to_vmem [thread:$0]  (!%p1180_p13), %s1286_s1, 4096, %s143_s29, [#allocation3], %s1088_s18, %s1088_s18, %s1089_s19  }
  0x2d   : > { %p1298_p0 = scmp.ne.s32.totalorder %s1295_s26, 0 }
  0x2e   : > { %p1299_p2 = scmp.ne.s32.totalorder (!%p1298_p0), %s1296_s27, 0 }
  0x2f   : > { %169 = sbr.rel (%p1298_p0) target bundleno = 321 (0x141), region = 32 }
  0x36   : > { %1056 = dma.done.wait (%p1299_p2), [#allocation3], 4096  }
  0x37   : > { %1058 = vsyncadd (%p1299_p2), [#allocation3], 4294963200  ;;  %p193_p4 = scmp.lt.s32.totalorder %s1077_s15, 1  ;;  %v221_v0 = vld [vmem:[#allocation2 + $0x40] sm:$0xff]  ;;  %v222_v1 = vld [vmem:[#allocation2 + $0x48] sm:$0xff]  ;;  %vm229_vm0 = vcmask 523264  }
  0x38   : > { %v410_v2 = vld [vmem:[#allocation2 + $0xc0] sm:$0xff]  ;;  %v836_v3 = vpack.c.bf16 %v222_v1, %v221_v0  ;;  %v411_v4 = vld [vmem:[#allocation2 + $0xc8] sm:$0xff]  ;;  %v223_v5 = vld [vmem:[#allocation2 + $0x50] sm:$0xff]  ;;  %s190_s30 = sand.u32 1, %s1069_s13   ;;  %s719_s10 = sshll.u32 %s1077_s15, 9 }
  0x39   : > { %s194_s28 = scalar_select %p193_p4, %s1077_s15, 1  ;;  %v224_v6 = vld [vmem:[#allocation2 + $0x58] sm:$0xff]  ;;  %v868_v7 = vpack.c.bf16 %v411_v4, %v410_v2  ;;  %v412_v9 = vld [vmem:[#allocation2 + $0xd0] sm:$0xff]  ;;  %v225_v11 = vld [vmem:[#allocation2 + $0x60] sm:$0xff] }
  0x3a   : > { %v840_v8 = vpack.c.bf16 %v224_v6, %v223_v5  ;;  %v413_v10 = vld [vmem:[#allocation2 + $0xd8] sm:$0xff]  ;;  %837 = vmatprep.subr.bf16.mxu0 %v836_v3  ;;  %v226_v13 = vld [vmem:[#allocation2 + $0x68] sm:$0xff]  ;;  %v414_v14 = vld [vmem:[#allocation2 + $0xe0] sm:$0xff]  ;;  %s697_s5 = sshll.u32 %s190_s30, 5  ;;  %s1237_s19 = scalar_lea.hbm %s1288_s3, %s719_s10 }
  0x3b   : > { %s904_s4 = smul.u32 24, %s194_s28  ;;  %v872_v12 = vpack.c.bf16 %v413_v10, %v412_v9  ;;  %v415_v15 = vld [vmem:[#allocation2 + $0xe8] sm:$0xff]  ;;  %869 = vmatprep.subr.bf16.mxu1 %v868_v7  ;;  %839 = vmatpush3.bf16.msra.mxu0 %v836_v3  ;;  %v844_v16 = vpack.c.bf16 %v226_v13, %v225_v11  ;;  %v227_v19 = vld [vmem:[#allocation2 + $0x70] sm:$0xff]  ;;  %v228_v20 = vld [vmem:[#allocation2 + $0x78] sm:$0xff]  ;;  %s192_s8 = scalar_lea.vmem [#allocation5], %s697_s5 }
  0x3c   : > { %871 = vmatpush3.bf16.msra.mxu1 %v868_v7  ;;  %841 = vmatprep.subr.bf16.mxu0 %v840_v8  ;;  %v876_v18 = vpack.c.bf16 %v415_v15, %v414_v14  ;;  %v416_v22 = vld [vmem:[#allocation2 + $0xf0] sm:$0xff]  ;;  %v417_v23 = vld [vmem:[#allocation2 + $0xf8] sm:$0xff]  ;;  %v848_v24 = vpack.c.bf16 %v228_v20, %v227_v19  ;;  %v212_v26 = vld [vmem:[#allocation2] sm:$0xff]  ;;  %s597_s9 = sshll.u32 %s192_s8, 4  ;;  %s1239_s15 = scalar_lea.sflag [#allocation4], %s190_s30  ;;  %s1232_s9 = int_to_ptr.vmem [resolvable:$true] %s597_s9 }
  0x3d   : > { %s1211_s29 = scalar_lea.vmem %s1285_s0, %s904_s4  ;;  %873 = vmatprep.subr.bf16.mxu1 %v872_v12  ;;  %v880_v25 = vpack.c.bf16 %v417_v23, %v416_v22  ;;  %v213_v27 = vld [vmem:[#allocation2 + $0x8] sm:$0xff]  ;;  %v401_v28 = vld [vmem:[#allocation2 + $0x80] sm:$0xff]  ;;  %v214_v32 = vld [vmem:[#allocation2 + $0x10] sm:$0xff]  ;;  %s1003_s21 = scalar_lea.vmem %s1232_s9, 512 }
  0x3e   : > { %v699_v17 = vld [vmem:[%s1211_s29 + $0x1] sm:$0xff]  ;;  %v402_v29 = vld [vmem:[#allocation2 + $0x88] sm:$0xff]  ;;  %v852_v30 = vpack.c.bf16 %v213_v27, %v212_v26  ;;  %v700_v36 = vld [vmem:[%s1211_s29 + $0x9] sm:$0xff]  ;;  %p1004_p8 = scmp.ne.s32.totalorder %s1232_s9, %s1003_s21  ;;  %p1300_p10 = scmp.ne.s32.totalorder %s1293_s22, 0 }
  0x3f   : > { %776 = vmatprep.mubr.msk.f32.mxu0 %vm229_vm0, %v699_v17  ;;  %v701_v21 = vld [vmem:[%s1211_s29 + $0x2] sm:$0xff]  ;;  %843 = vmatpush3.bf16.msra.mxu0 %v840_v8  ;;  %v884_v31 = vpack.c.bf16 %v402_v29, %v401_v28  ;;  %v702_v37 = vld [vmem:[%s1211_s29 + $0xa] sm:$0xff]  ;;  %v217_v41 = vld [vmem:[#allocation2 + $0x28] sm:$0xff]  ;;  %s1090_s23 = smov [#allocation5]  }
  0x40   : > { %814 = vmatprep.mubr.msk.f32.mxu1 %vm229_vm0, %v701_v21  ;;  %875 = vmatpush3.bf16.msra.mxu1 %v872_v12  ;;  %v215_v33 = vld [vmem:[#allocation2 + $0x18] sm:$0xff]  ;;  %v403_v34 = vld [vmem:[#allocation2 + $0x90] sm:$0xff]  ;;  %v216_v40 = vld [vmem:[#allocation2 + $0x20] sm:$0xff]  ;;  %p1005_p11 = pnand %p1004_p8, %p1300_p10  ;;  %s1007_s28 = sshll.u32 %s1090_s23, 4  ;;  %s1008_s28 = int_to_ptr.vmem [resolvable:$false] %s1007_s28 }
  0x41   : > { %845 = vmatprep.subr.bf16.mxu0 %v844_v16  ;;  %877 = vmatprep.subr.bf16.mxu1 %v876_v18  ;;  %v404_v35 = vld [vmem:[#allocation2 + $0x98] sm:$0xff]  ;;  %v856_v38 = vpack.c.bf16 %v215_v33, %v214_v32  ;;  %v405_v42 = vld [vmem:[#allocation2 + $0xa0] sm:$0xff]  ;;  %v406_v43 = vld [vmem:[#allocation2 + $0xa8] sm:$0xff]  ;;  %v860_v45 = vpack.c.bf16 %v217_v41, %v216_v40  ;;  %s1009_s4 = scalar_lea.vmem %s1008_s28, 1024  ;;  %p1010_p1 = scmp.lt.s32.totalorder %s1232_s9, %s1008_s28 }
  0x42   : > { %v888_v39 = vpack.c.bf16 %v404_v35, %v403_v34  ;;  %v201_v44 = vld [vmem:[%s1211_s29] sm:$0xff]  ;;  %v892_v46 = vpack.c.bf16 %v406_v43, %v405_v42  ;;  %v219_v48 = vld [vmem:[#allocation2 + $0x38] sm:$0xff]  ;;  %p1006_p13 = pneg %p1005_p11  ;;  %p1011_p3 = scmp.lt.s32.totalorder %s1009_s4, %s1003_s21 }
  0x43   : > { %847 = vmatpush3.bf16.msra.mxu0 %v844_v16  ;;  %v218_v47 = vld [vmem:[#allocation2 + $0x30] sm:$0xff]  ;;  %v408_v50 = vld [vmem:[#allocation2 + $0xb8] sm:$0xff] }
  0x44   : > { %879 = vmatpush3.bf16.msra.mxu1 %v876_v18  ;;  %849 = vmatprep.subr.bf16.mxu0 %v848_v24  ;;  %v407_v49 = vld [vmem:[#allocation2 + $0xb0] sm:$0xff]  ;;  %v864_v51 = vpack.c.bf16 %v219_v48, %v218_v47  ;;  %v202_v53 = vld [vmem:[%s1211_s29 + $0x8] sm:$0xff]  ;;  %p1012_p5 = por %p1011_p3, %p1010_p1 }
  0x45   : > { %881 = vmatprep.subr.bf16.mxu1 %v880_v25  ;;  %v896_v52 = vpack.c.bf16 %v408_v50, %v407_v49  ;;  %v707_v54 = vld [vmem:[%s1287_s2] ss:$0 sm:$0xff] }
  0x46   : > { %p1013_p6 = pnand %p1012_p5, %p1006_p13 }
  0x47   : > { %851 = vmatpush3.bf16.msra.mxu0 %v848_v24 }
  0x48   : > { %883 = vmatpush3.bf16.msra.mxu1 %v880_v25  ;;  %853 = vmatprep.subr.bf16.mxu0 %v852_v30 }
  0x49   : > { %885 = vmatprep.subr.bf16.mxu1 %v884_v31 }
  0x4a   : > { %777 = vmatmul.mubr.msk.f32.vlgmr.msra.gmra.mrb[0].mxu0 %vm229_vm0, %v700_v36 }
  0x4b   : > { %855 = vmatpush3.bf16.msra.mxu0 %v852_v30  ;;  %815 = vmatmul.mubr.msk.f32.vlgmr.msra.gmra.mrb[0].mxu1 %vm229_vm0, %v702_v37 }
  0x4c   : > { %887 = vmatpush3.bf16.msra.mxu1 %v884_v31  ;;  %857 = vmatprep.subr.bf16.mxu0 %v856_v38 }
  0x4d   : > { %889 = vmatprep.subr.bf16.mxu1 %v888_v39  ;;  %795 = vmatprep.mubr.msk.f32.mxu0 %vm229_vm0, %v201_v44 }
  0x4e   : > { %833 = vmatprep.mubr.msk.f32.mxu1 %vm229_vm0, %v699_v17 }
  0x4f   : > { %859 = vmatpush3.bf16.msra.mxu0 %v856_v38 }
  0x50   : > { %891 = vmatpush3.bf16.msra.mxu1 %v888_v39  ;;  %861 = vmatprep.subr.bf16.mxu0 %v860_v45 }
  0x51   : > { %893 = vmatprep.subr.bf16.mxu1 %v892_v46 }
  0x53   : > { %863 = vmatpush3.bf16.msra.mxu0 %v860_v45 }
  0x54   : > { %895 = vmatpush3.bf16.msra.mxu1 %v892_v46  ;;  %865 = vmatprep.subr.bf16.mxu0 %v864_v51 }
  0x55   : > { %897 = vmatprep.subr.bf16.mxu1 %v896_v52 }
  0x57   : > { %867 = vmatpush3.bf16.msra.mxu0 %v864_v51 }
  0x58   : > { %899 = vmatpush3.bf16.msra.mxu1 %v896_v52 }
  0x5a   : > { %796 = vmatmul.mubr.msk.f32.vlgmr.msra.gmra.mrb[0].mxu0 %vm229_vm0, %v202_v53 }
  0x5b   : > { %834 = vmatmul.mubr.msk.f32.vlgmr.msra.gmra.mrb[0].mxu1 %vm229_vm0, %v700_v36 }
 0x12d   : > { %v797_v55 = vpop.f32.mrb[0].mxu0 }
 0x12e   : > { %v399_v56 = vadd.f32 %v797_v55, %v707_v54  ;;  %v835_v57 = vpop.f32.mrb[0].mxu1  ;;  %v383_v58 = vpop.f32.mrb[1].mxu0 }
 0x12f   : > { %v575_v59 = vadd.f32 %v835_v57, %v707_v54  ;;  %v398_v60 = vadd.f32 %v707_v54, %v383_v58  ;;  %v565_v61 = vpop.f32.mrb[1].mxu1 }
 0x130   : > { %577 = vst [vmem:[%s192_s8 + $0x8] sm:$0xff] %v399_v56  ;;  %v574_v62 = vadd.f32 %v707_v54, %v565_v61 }
 0x131   : > { %713 = vst [vmem:[%s192_s8 + $0x18] sm:$0xff] %v575_v59  ;;  %576 = vst [vmem:[%s192_s8] sm:$0xff] %v398_v60 }
 0x132   : > { %712 = vst [vmem:[%s192_s8 + $0x10] sm:$0xff] %v574_v62 }
 0x133   : > { %1016 = shalt.err (!%p1013_p6)
}
 0x134   : > { %s1017_s26 = scalar_lea.hbm %s1237_s19, 512  ;;  %s1021_s30 = scalar_lea.hbm %s1288_s3, 1024 }
 0x135   : > { %p1018_p7 = scmp.ne.s32.totalorder %s1237_s19, %s1017_s26  ;;  %p1022_p0 = scmp.lt.u32.totalorder %s1237_s19, %s1288_s3 }
 0x136   : > { %p1023_p2 = scmp.lt.u32.totalorder %s1021_s30, %s1017_s26  ;;  %p1025_p8 = scmp.lt.u32.totalorder %s1017_s26, %s1237_s19 }
 0x137   : > { %p1019_p9 = pnand %p1018_p7, %p1300_p10 }
 0x138   : > { %p1024_p4 = por %p1023_p2, %p1022_p0 }
 0x139   : > { %p1020_p12 = pneg %p1019_p9 }
 0x13a   : > { %p1026_p11 = por %p1025_p8, %p1024_p4 }
 0x13c   : > { %p1027_p13 = pnand %p1026_p11, %p1020_p12 }
 0x13e   : > { %1030 = shalt.err (!%p1027_p13)
}
 0x13f   : > { %s1091_s7 = smov 128   ;;  %s1092_s8 = smov 8  }
 0x140   : > { %909 = dma.vmem_to_hbm [thread:$0]  (%p1300_p10), %s1232_s9, 512, %s1237_s19, %s1239_s15, %s1091_s7, %s1091_s7, %s1092_s8  }
 0x141 PF: > { %p921_p1 = scmp.ge.s32.totalorder %s1085_s17, 2  ;;  %s612_s10 = sand.u32 1, %s1065_s12  }
 0x142   : > { %p1301_p3 = scmp.ne.s32.totalorder %s1294_s24, 0  ;;  %s613_s11 = scalar_lea.sflag [#allocation4], %s612_s10 }
 0x144   : > { %p916_p5 = pnand %p921_p1, %p1301_p3 }
 0x146   : > { %1060 = dma.done.wait (!%p916_p5), %s613_s11, 512  }
 0x147   : > { %1062 = vsyncadd (!%p916_p5), %s613_s11, 4294966784  ;;  %s17_s17 = sadd.s32 1, %s1085_s17   ;;  %s1302_s12 = smov %s1069_s13 }
 0x148   : > { %p14_p6 = scmp.ge.s32.totalorder %s17_s17, 4   ;;  %s1303_s13 = smov %s1073_s14 }
 0x149   : > { %s1304_s14 = smov %s1166_s25  ;;  %s1305_s15 = smov %s1081_s16 }
 0x14a   : > { %s1306_s16 = smov %s1308_s20  ;;  %16 = sbr.rel (!%p14_p6) target bundleno = 5 (0x5), region = 79 }
 0x151   :  { %618 = vsyncpa [#allocation3], 1 }
 0x152   :  { %620 = vsyncpa [#allocation3 + $0x1], 1 }
 0x153   :  { %621 = vsyncpa [#allocation4], 1 }
 0x154   :  { %623 = vsyncpa [#allocation4 + $0x1], 1 }

</bundles_post_ra>
